<compile_context>
chip_gen: v7x
topology: tpu7x:2x2x1
jax: 0.10.0
libtpu: 0.0.40
codegen_flags: <defaults>
</compile_context>

<pallas_src>
import functools

import jax
import jax.numpy as jnp
import numpy as np
from jax.experimental import pallas as pl
from jax.experimental.pallas import tpu as pltpu


# ----------------------------- kernels --------------------------------------


def _ffn_kernel_single(x_ref, w1_ref, b1_ref, w2_ref, b2_ref, o_ref, *,
                       approx_gelu):
    """Fused FFN, whole (padded) E*D intermediate in one shot."""
    h = jnp.dot(x_ref[...], w1_ref[...], preferred_element_type=jnp.float32)
    h = jax.nn.gelu(h + b1_ref[...].astype(jnp.float32),
                    approximate=approx_gelu)
    y = jnp.dot(h.astype(w2_ref.dtype), w2_ref[...],
                preferred_element_type=jnp.float32)
    o_ref[...] = (y + b2_ref[...].astype(jnp.float32)).astype(o_ref.dtype)


def _ffn_kernel_tiled(x_ref, w1_ref, b1_ref, w2_ref, b2_ref, o_ref, acc_ref, *,
                      approx_gelu):
    """Fused FFN with the E*D intermediate tiled on the last (reduction) axis."""
    d = pl.program_id(1)

    @pl.when(d == 0)
    def _():
        acc_ref[...] = jnp.zeros_like(acc_ref)

    h = jnp.dot(x_ref[...], w1_ref[...], preferred_element_type=jnp.float32)
    h = jax.nn.gelu(h + b1_ref[...].astype(jnp.float32),
                    approximate=approx_gelu)
    acc_ref[...] += jnp.dot(h.astype(w2_ref.dtype), w2_ref[...],
                            preferred_element_type=jnp.float32)

    @pl.when(d == pl.num_programs(1) - 1)
    def _():
        o_ref[...] = (acc_ref[...] + b2_ref[...].astype(jnp.float32)).astype(
            o_ref.dtype)


# --------------------------- helpers / tiling --------------------------------


def _round_up(v, m):
    return (v + m - 1) // m * m


def _vmem_capacity_bytes():
    """Generation-aware physical VMEM size (v5e/v6e: 128 MiB, v7x: 64 MiB)."""
    try:
        return int(pltpu.get_tpu_info().vmem_capacity_bytes)
    except Exception:
        pass
    try:
        kind = jax.devices()[0].device_kind.lower()
        if "v5 lite" in kind or "v5e" in kind or "v6" in kind:
            return 128 * 1024 * 1024
    except Exception:
        pass
    return 64 * 1024 * 1024  # conservative default (v7x-sized)


def prepare_divided_ffn_params(w1, b1, w2, b2, compute_dtype, ed_pad):
    """One-time weight re-layout (belongs at model init, not in the fwd pass)."""
    E, H, D = w1.shape
    ED = E * D
    w1c = jnp.transpose(w1, (1, 0, 2)).reshape(H, ED)
    w2c = w2.reshape(ED, H) / E                       # fold 1/E mean into W2
    b1c = b1.reshape(1, ED)
    if ed_pad > ED:                                   # exact zero padding
        pad = ed_pad - ED
        w1c = jnp.pad(w1c, ((0, 0), (0, pad)))
        w2c = jnp.pad(w2c, ((0, pad), (0, 0)))
        b1c = jnp.pad(b1c, ((0, 0), (0, pad)))
    w1c = w1c.astype(compute_dtype)
    w2c = w2c.astype(compute_dtype)
    b1c = b1c.astype(jnp.float32)
    b2m = jnp.mean(b2.astype(jnp.float32), axis=0, keepdims=True)  # (1, H)
    return w1c, b1c, w2c, b2m


def _choose_tiles(T, H, ed_pad, tm_req, td_req, wb, ob, budget):
    """Pick (token tile tm, feature tile td) under a per-chip VMEM budget."""

    def shrink_tm(tm, fits):
        # keep >= 2 token tiles (megacore sharding on v7x + pipeline overlap)
        # and keep the per-tile footprint inside the budget.
        while tm > 8 and (-(-T // tm) < 2 or not fits(tm)):
            tm //= 2
        return tm

    tm0 = 1024 if budget >= (64 << 20) else 512

    # resident fused weights (single-buffered via pl.Buffered(1)) + fp32 biases
    resident = 2 * H * ed_pad * wb + (ed_pad + H) * 4

    if td_req is not None:
        assert ed_pad % td_req == 0, f"ed_pad={ed_pad} not divisible by td={td_req}"
        td = td_req
        single = (td == ed_pad)
    else:
        single = resident <= int(budget * 0.6)
        td = ed_pad if single else None

    if single:
        rem = budget - resident

        def fits(t):  # double-buffered x/out tiles + fp32 intermediate
            return (2 * t * H * (wb + ob) + t * ed_pad * 4 + t * H * 4) <= rem

        tm = tm_req if tm_req is not None else shrink_tm(tm0, fits)
        td = ed_pad
    else:
        def fits(t):  # io + fp32 accumulator + one minimal (256-wide) weight slab
            io = 2 * t * H * (wb + ob) + 2 * t * H * 4
            slab = 4 * H * 256 * wb + 2 * 256 * 4 + t * 256 * 4
            return io + slab + H * 4 <= budget

        tm = tm_req if tm_req is not None else shrink_tm(tm0, fits)
        if td is None:
            io = 2 * tm * H * (wb + ob) + 2 * tm * H * 4 + H * 4
            td, cand = 256, 512
            while cand < ed_pad:
                if ed_pad % cand == 0:
                    need = io + 4 * H * cand * wb + 2 * cand * 4 + tm * cand * 4
                    if need <= budget:
                        td = cand  # keep the largest qualifying 256-multiple
                cand += 256
    return tm, td


# --------------------------- fused pallas call --------------------------------


@functools.partial(jax.jit, static_argnames=("tm", "td", "out_dtype",
                                             "approx_gelu", "vmem_limit"))
def _fused_ffn(x, w1c, b1c, w2c, b2m, *, tm, td, out_dtype, approx_gelu,
               vmem_limit):
    T, H = x.shape
    ED = w1c.shape[1]
    n_t = T // tm

    # Constant-index blocks: single buffer (loaded once, resident for all tiles)
    resident = pl.Buffered(1)

    if td == ED:
        # Single-shot: fused weights stay resident in VMEM across token tiles.
        grid = (n_t,)
        in_specs = [
            pl.BlockSpec((tm, H), lambda i: (i, 0)),                           # x tile
            pl.BlockSpec((H, ED), lambda i: (0, 0), pipeline_mode=resident),   # W1cat
            pl.BlockSpec((1, ED), lambda i: (0, 0), pipeline_mode=resident),   # b1cat
            pl.BlockSpec((ED, H), lambda i: (0, 0), pipeline_mode=resident),   # W2cat/E
            pl.BlockSpec((1, H), lambda i: (0, 0), pipeline_mode=resident),    # mean(b2)
        ]
        out_specs = pl.BlockSpec((tm, H), lambda i: (i, 0))
        scratch_shapes = []
        kernel = functools.partial(_ffn_kernel_single, approx_gelu=approx_gelu)
        dim_sem = ("parallel",)
    else:
        # E*D sub-tiled (weights streamed): reduction axis last, fp32 scratch.
        grid = (n_t, ED // td)
        in_specs = [
            pl.BlockSpec((tm, H), lambda i, d: (i, 0)),
            pl.BlockSpec((H, td), lambda i, d: (0, d)),
            pl.BlockSpec((1, td), lambda i, d: (0, d)),
            pl.BlockSpec((td, H), lambda i, d: (d, 0)),
            pl.BlockSpec((1, H), lambda i, d: (0, 0), pipeline_mode=resident),
        ]
        out_specs = pl.BlockSpec((tm, H), lambda i, d: (i, 0))
        scratch_shapes = [pltpu.VMEM((tm, H), jnp.float32)]
        kernel = functools.partial(_ffn_kernel_tiled, approx_gelu=approx_gelu)
        dim_sem = ("parallel", "arbitrary")

    return pl.pallas_call(
        kernel,
        out_shape=jax.ShapeDtypeStruct((T, H), out_dtype),
        grid_spec=pltpu.PrefetchScalarGridSpec(
            num_scalar_prefetch=0,
            grid=grid,
            in_specs=in_specs,
            out_specs=out_specs,
            scratch_shapes=scratch_shapes,
        ),
        compiler_params=pltpu.CompilerParams(
            dimension_semantics=dim_sem,
            vmem_limit_bytes=int(vmem_limit),
        ),
    )(x, w1c, b1c, w2c, b2m)


def divided_ffn(x, w1, b1, w2, b2, *, tm=None, td=None, compute_dtype=None,
                approx_gelu=None):
    """x: (T, H); w1: (E, H, D); b1: (E, D); w2: (E, D, H); b2: (E, H)."""
    T, H = x.shape
    E, _, D = w1.shape
    ED = E * D

    # bf16 compute by default: every MXU generation is natively bf16 and it
    # halves weight HBM/VMEM traffic; fp32 compute is opt-in strict numerics.
    compute_dtype = jnp.dtype(jnp.bfloat16 if compute_dtype is None
                              else compute_dtype)
    out_dtype = jnp.dtype(x.dtype)
    if approx_gelu is None:
        # tanh-GELU routes to the EUP (separate VLIW slot, ~free); only default
        # to it when bf16 rounding already dominates.  fp32 path keeps the
        # exact erf GELU of PyTorch's nn.GELU().
        approx_gelu = bool(compute_dtype == jnp.bfloat16)

    ed_pad = _round_up(ED, 256)  # MXU-aligned (2x256x256 MXU on v6e/v7x)
    params = prepare_divided_ffn_params(w1, b1, w2, b2, compute_dtype, ed_pad)

    vmem_cap = _vmem_capacity_bytes()
    vmem_limit = max(min(int(vmem_cap * 0.75), vmem_cap - 8 * 1024 * 1024),
                     32 * 1024 * 1024)
    budget = int(vmem_limit * 0.85)

    wb = jnp.dtype(compute_dtype).itemsize
    ob = jnp.dtype(out_dtype).itemsize
    tm, td = _choose_tiles(T, H, ed_pad, tm, td, wb, ob, budget)

    # Pad ragged token counts up to a multiple of the token tile (sliced off
    # after the call); NOTE: configs with H < 128 are lane-sparse on output,
    # real configs (H multiple of 128) are lane-dense.
    Tp = _round_up(T, tm)
    xp = x.astype(compute_dtype)
    if Tp != T:
        xp = jnp.pad(xp, ((0, Tp - T), (0, 0)))

    out = _fused_ffn(xp, *params, tm=tm, td=td, out_dtype=out_dtype,
                     approx_gelu=approx_gelu, vmem_limit=vmem_limit)
    return out[:T] if Tp != T else out


# ------------------------------ reference ------------------------------------


def _reference(x, w1, b1, w2, b2):
    # pure-JAX reference of DividedFFN.forward (per-expert MLP, mean-combined)
    h = jnp.einsum("th,ehd->etd", x, w1) + b1[:, None, :]
    h = jax.nn.gelu(h, approximate=False)
    y = jnp.einsum("etd,edh->eth", h, w2) + b2[:, None, :]
    return jnp.mean(y, axis=0)


if __name__ == "__main__":
    # config: hidden_size=32, intermediate_size=64, num_experts=4 -> D = 16
    batch, seq = 2, 8
    hidden_size = 32
    intermediate_size = 64
    num_experts = 4
    D = intermediate_size // num_experts

    key = jax.random.PRNGKey(0)
    kx, k1, k2, k3, k4 = jax.random.split(key, 5)

    x = jax.random.normal(kx, (batch, seq, hidden_size), dtype=jnp.float32)

    # deterministic synthetic parameters (uniform, roughly PyTorch Linear scale)
    bound1 = 1.0 / np.sqrt(hidden_size)
    bound2 = 1.0 / np.sqrt(D)
    w1 = jax.random.uniform(k1, (num_experts, hidden_size, D), jnp.float32,
                            -bound1, bound1)
    b1 = jax.random.uniform(k2, (num_experts, D), jnp.float32, -bound1, bound1)
    w2 = jax.random.uniform(k3, (num_experts, D, hidden_size), jnp.float32,
                            -bound2, bound2)
    b2 = jax.random.uniform(k4, (num_experts, hidden_size), jnp.float32,
                            -bound2, bound2)

    x2d = x.reshape(batch * seq, hidden_size)
    ref = _reference(x2d, w1, b1, w2, b2)

    # default path: bf16 weights/activations (fp32 MXU accumulation), tanh GELU
    out_bf16 = jax.block_until_ready(divided_ffn(x2d, w1, b1, w2, b2))
    np.testing.assert_allclose(np.asarray(out_bf16, dtype=np.float32),
                               np.asarray(ref), rtol=5e-2, atol=5e-2)

    # strict fp32 path (exact erf GELU): preserves the PyTorch module numerics
    out_f32 = jax.block_until_ready(
        divided_ffn(x2d, w1, b1, w2, b2, compute_dtype=jnp.float32))
    np.testing.assert_allclose(np.asarray(out_f32), np.asarray(ref),
                               rtol=1e-4, atol=1e-4)

    # ragged token count exercises the token-padding path
    out_rag = jax.block_until_ready(divided_ffn(x2d[:13], w1, b1, w2, b2))
    np.testing.assert_allclose(np.asarray(out_rag, dtype=np.float32),
                               np.asarray(ref[:13]), rtol=5e-2, atol=5e-2)

    print("KERNEL_OK")
</pallas_src>

<mosaic_0001>
module attributes {stable_mosaic.version = 11 : i64} {
  func.func @_ffn_kernel_single(%arg0: i32, %arg1: memref<8x32xbf16, #tpu.memory_space<vmem>>, %arg2: memref<32x256xbf16, #tpu.memory_space<vmem>>, %arg3: memref<1x256xf32, #tpu.memory_space<vmem>>, %arg4: memref<256x32xbf16, #tpu.memory_space<vmem>>, %arg5: memref<1x32xf32, #tpu.memory_space<vmem>>, %arg6: memref<8x32xf32, #tpu.memory_space<vmem>>) attributes {dimension_semantics = [#tpu.dimension_semantics<parallel>], iteration_bounds = array<i64: 2>, scalar_prefetch = 0 : i64, scratch_operands = 0 : i64, tpu.core_type = #tpu.core_type<tc>, window_params = [{transform_indices = @transform_0, window_bounds = array<i64: 8, 32>}, {pipeline_mode = #tpu.pipeline_mode<synchronous>, transform_indices = @transform_1, window_bounds = array<i64: 32, 256>}, {pipeline_mode = #tpu.pipeline_mode<synchronous>, transform_indices = @transform_2, window_bounds = array<i64: 1, 256>}, {pipeline_mode = #tpu.pipeline_mode<synchronous>, transform_indices = @transform_3, window_bounds = array<i64: 256, 32>}, {pipeline_mode = #tpu.pipeline_mode<synchronous>, transform_indices = @transform_4, window_bounds = array<i64: 1, 32>}, {transform_indices = @transform_5, window_bounds = array<i64: 8, 32>}]} {
    %c0 = arith.constant 0 : index
    %c0_0 = arith.constant 0 : index
    %0 = vector.load %arg1[%c0, %c0_0] : memref<8x32xbf16, #tpu.memory_space<vmem>>, vector<8x32xbf16>
    %c0_1 = arith.constant 0 : index
    %c0_2 = arith.constant 0 : index
    %1 = vector.load %arg2[%c0_1, %c0_2] : memref<32x256xbf16, #tpu.memory_space<vmem>>, vector<32x256xbf16>
    %cst = arith.constant dense<0.000000e+00> : vector<8x256xf32>
    %2 = tpu.matmul %0, %1, %cst {dimension_numbers = #tpu.dot_dimension_numbers<[1], [0], [0], [1], [0, 0, 1, 1], [], []>} : vector<8x32xbf16>, vector<32x256xbf16>, vector<8x256xf32> -> vector<8x256xf32>
    %c0_3 = arith.constant 0 : index
    %c0_4 = arith.constant 0 : index
    %3 = vector.load %arg3[%c0_3, %c0_4] : memref<1x256xf32, #tpu.memory_space<vmem>>, vector<1x256xf32>
    %4 = vector.broadcast %3 : vector<1x256xf32> to vector<8x256xf32>
    %5 = arith.addf %2, %4 : vector<8x256xf32>
    %6 = arith.mulf %5, %5 : vector<8x256xf32>
    %7 = arith.mulf %5, %6 : vector<8x256xf32>
    %cst_5 = arith.constant 4.471500e-02 : f32
    %8 = vector.broadcast %cst_5 : f32 to vector<8x256xf32>
    %9 = arith.mulf %8, %7 : vector<8x256xf32>
    %10 = arith.addf %5, %9 : vector<8x256xf32>
    %cst_6 = arith.constant 0.797884583 : f32
    %11 = vector.broadcast %cst_6 : f32 to vector<8x256xf32>
    %12 = arith.mulf %11, %10 : vector<8x256xf32>
    %13 = math.tanh %12 : vector<8x256xf32>
    %cst_7 = arith.constant 1.000000e+00 : f32
    %14 = vector.broadcast %cst_7 : f32 to vector<8x256xf32>
    %15 = arith.addf %14, %13 : vector<8x256xf32>
    %cst_8 = arith.constant 5.000000e-01 : f32
    %16 = vector.broadcast %cst_8 : f32 to vector<8x256xf32>
    %17 = arith.mulf %16, %15 : vector<8x256xf32>
    %18 = arith.mulf %5, %17 : vector<8x256xf32>
    %19 = arith.truncf %18 : vector<8x256xf32> to vector<8x256xbf16>
    %c0_9 = arith.constant 0 : index
    %c0_10 = arith.constant 0 : index
    %20 = vector.load %arg4[%c0_9, %c0_10] : memref<256x32xbf16, #tpu.memory_space<vmem>>, vector<256x32xbf16>
    %cst_11 = arith.constant dense<0.000000e+00> : vector<8x32xf32>
    %21 = tpu.matmul %19, %20, %cst_11 {dimension_numbers = #tpu.dot_dimension_numbers<[1], [0], [0], [1], [0, 0, 1, 1], [], []>} : vector<8x256xbf16>, vector<256x32xbf16>, vector<8x32xf32> -> vector<8x32xf32>
    %c0_12 = arith.constant 0 : index
    %c0_13 = arith.constant 0 : index
    %22 = vector.load %arg5[%c0_12, %c0_13] : memref<1x32xf32, #tpu.memory_space<vmem>>, vector<1x32xf32>
    %23 = vector.broadcast %22 : vector<1x32xf32> to vector<8x32xf32>
    %24 = arith.addf %21, %23 : vector<8x32xf32>
    %c0_14 = arith.constant 0 : index
    %c0_15 = arith.constant 0 : index
    %25 = vector.load %arg6[%c0_14, %c0_15] : memref<8x32xf32, #tpu.memory_space<vmem>>, vector<8x32xf32>
    tpu.vector_store %arg6[%c0_14, %c0_15], %24 {strides = array<i32>} : memref<8x32xf32, #tpu.memory_space<vmem>>, vector<8x32xf32>,
    return
  }
  func.func @transform_0(%arg0: i32) -> (i32, i32) {
    %c0_i32 = arith.constant 0 : i32
    %c0_i32_0 = arith.constant 0 : i32
    return %arg0, %c0_i32 : i32, i32
  }
  func.func @transform_1(%arg0: i32) -> (i32, i32) {
    %c0_i32 = arith.constant 0 : i32
    %c0_i32_0 = arith.constant 0 : i32
    %c0_i32_1 = arith.constant 0 : i32
    return %c0_i32, %c0_i32_0 : i32, i32
  }
  func.func @transform_2(%arg0: i32) -> (i32, i32) {
    %c0_i32 = arith.constant 0 : i32
    %c0_i32_0 = arith.constant 0 : i32
    %c0_i32_1 = arith.constant 0 : i32
    return %c0_i32, %c0_i32_0 : i32, i32
  }
  func.func @transform_3(%arg0: i32) -> (i32, i32) {
    %c0_i32 = arith.constant 0 : i32
    %c0_i32_0 = arith.constant 0 : i32
    %c0_i32_1 = arith.constant 0 : i32
    return %c0_i32, %c0_i32_0 : i32, i32
  }
  func.func @transform_4(%arg0: i32) -> (i32, i32) {
    %c0_i32 = arith.constant 0 : i32
    %c0_i32_0 = arith.constant 0 : i32
    %c0_i32_1 = arith.constant 0 : i32
    return %c0_i32, %c0_i32_0 : i32, i32
  }
  func.func @transform_5(%arg0: i32) -> (i32, i32) {
    %c0_i32 = arith.constant 0 : i32
    %c0_i32_0 = arith.constant 0 : i32
    return %arg0, %c0_i32 : i32, i32
  }
}

</mosaic_0001>

<bundles_post_ra>
// kernel: _fused_ffn.1
= control target key start
LH: loop header
LB: loop body
LE: loop exit
PB: predicated region body
PF: predicated region fallthrough
CT: control target
= control target key end

     0   :  { %10 = vsyncpa [#allocation3], 0  ;;  %s956_s0 = inlined_call_operand.vmem [shape: bf16[16,32], index: 0, kind: input, shape index: {}]   ;;  %s957_s1 = inlined_call_operand.vmem [shape: bf16[32,256], index: 1, kind: input, shape index: {}]   ;;  %s958_s2 = inlined_call_operand.vmem [shape: f32[1,256], index: 2, kind: input, shape index: {}]   ;;  %s959_s3 = inlined_call_operand.vmem [shape: bf16[256,32], index: 3, kind: input, shape index: {}]   ;;  %s960_s4 = inlined_call_operand.vmem [shape: f32[1,32], index: 4, kind: input, shape index: {}]   ;;  %s961_s5 = inlined_call_operand.hbm [shape: f32[16,32], index: 5, kind: output, shape index: {}]  }
   0x1   :  { %12 = vsyncpa [#allocation3 + $0x1], 0  ;;  %s788_s18 = smov 0   ;;  %s790_s19 = smov 0  }
   0x2   :  { %s792_s20 = smov 0   ;;  %s794_s21 = smov 0  }
   0x3 LB: > { %s809_s22 = sadd.s32 4294967295, %s754_s21   ;;  %s572_s23 = sadd.s32 4294967294, %s754_s21   ;;  %s754_s21 = sphi %s794_s21, %s967_s21   ;;  %s750_s20 = sphi %s792_s20, %s966_s20   ;;  %s746_s19 = sphi %s790_s19, %s965_s19   ;;  %s742_s18 = sphi %s788_s18, %s964_s18  }
   0x4   : > { %s813_s24 = sadd.s32 1, %s754_s21   ;;  %s135_s25 = sadd.s32 1, %s750_s20 }
   0x5   : > { %s132_s26 = ssub.s32 %s754_s21, %s813_s24  ;;  %p145_p0 = scmp.ne.s32.totalorder %s750_s20, %s746_s19 }
   0x6   : > { %p133_p1 = scmp.eq.s32.totalorder %s132_s26, 0  ;;  %p146_p2 = scmp.eq.s32.totalorder %s809_s22, 1 }
   0x7   : > { %p151_p3 = scmp.ne.s32.totalorder %s746_s19, %s742_s18  ;;  %p152_p4 = scmp.eq.s32.totalorder %s572_s23, 1 }
   0x8   : > { %s824_s27 = scalar_select %p133_p1, %s750_s20, %s135_s25  }
   0x9   : > { %p826_p5 = por %p146_p2, %p145_p0  ;;  %p830_p6 = por %p152_p4, %p151_p3 }
   0xa   : > { %p575_p7 = scmp.ge.s32.totalorder %s754_s21, 1  ;;  %p189_p8 = scmp.lt.s32.totalorder %s754_s21, 3 }
   0xc   : > { %p190_p9 = pnand %p575_p7, %p189_p8 }
   0xd   : > { %v666_v0 = vld [vmem:[%s957_s1 + $0x4] ss:$8 sps:$4 sm:$0xff] (!%p190_p9)   ;;  %p216_p10 = scmp.lt.s32.totalorder (!%p190_p9), %s809_s22, 1  ;;  %v668_v1 = vld [vmem:[%s957_s1] ss:$8 sps:$4 sm:$0xff] (!%p190_p9)   ;;  %v756_v2 = vmov (!%p190_p9), 0   ;;  %v228_v22 = vlaneseq (!%p190_p9) }
   0xe   : > { %193 = sbr.rel (%p190_p9) target bundleno = 502 (0x1f6), region = 40  ;;  %294 = vmatprep.mubr.bf16.mxu0 (!%p190_p9), %v756_v2  ;;  %262 = vmatprep.subr.bf16.mxu0 (!%p190_p9), %v666_v0  ;;  %v669_v3 = vld [vmem:[%s957_s1 + $0x14] ss:$8 sps:$4 sm:$0xff] (!%p190_p9)   ;;  %v671_v4 = vld [vmem:[%s957_s1 + $0x10] ss:$8 sps:$4 sm:$0xff] (!%p190_p9)   ;;  %vm258_vm0 = vcmask (!%p190_p9), 261120  }
   0xf   : > { %263 = vmatpush1.bf16.msra.mxu0 (!%p190_p9), %v668_v1  ;;  %v672_v6 = vld [vmem:[%s959_s3 + $0x40] sm:$0xff] (!%p190_p9)   ;;  %v674_v8 = vld [vmem:[%s959_s3 + $0x48] sm:$0xff] (!%p190_p9)   ;;  %v676_v10 = vld [vmem:[%s959_s3 + $0x50] sm:$0xff] (!%p190_p9)   ;;  %v229_v23 = vshrl.u32 (!%p190_p9), %v228_v22, 7  ;;  %s213_s26 = sand.u32 (!%p190_p9), 1, %s746_s19   ;;  %s601_s8 = sshll.u32 (!%p190_p9), %s809_s22, 7 }
  0x10   : > { %264 = vmatprep.subr.bf16.mxu0 (!%p190_p9), %v669_v3  ;;  %v673_v7 = vld [vmem:[%s959_s3] sm:$0xff] (!%p190_p9)   ;;  %604 = vmatprep.subr.bf16.mxu1 (!%p190_p9), %v672_v6  ;;  %v675_v9 = vld [vmem:[%s959_s3 + $0x8] sm:$0xff] (!%p190_p9)   ;;  %v677_v11 = vld [vmem:[%s959_s3 + $0x10] sm:$0xff] (!%p190_p9)   ;;  %s576_s30 = sshll.u32 (!%p190_p9), %s213_s26, 3  ;;  %s913_s13 = scalar_lea.hbm (!%p190_p9), %s961_s5, %s601_s8 }
  0x11   : > { %605 = vmatpush3.bf16.msra.mxu1 (!%p190_p9), %v673_v7  ;;  %v678_v12 = vld [vmem:[%s959_s3 + $0x58] sm:$0xff] (!%p190_p9)   ;;  %v680_v14 = vld [vmem:[%s959_s3 + $0x60] sm:$0xff] (!%p190_p9)   ;;  %v682_v16 = vld [vmem:[%s959_s3 + $0x68] sm:$0xff] (!%p190_p9)   ;;  %v230_v24 = vsub.s32 (!%p190_p9), 0, %v229_v23  ;;  %v234_v26 = vsub.s32 (!%p190_p9), 1, %v229_v23  ;;  %s215_s9 = scalar_lea.vmem (!%p190_p9), [#allocation2], %s576_s30 }
  0x12   : > { %606 = vmatprep.subr.bf16.mxu1 (!%p190_p9), %v674_v8  ;;  %v679_v13 = vld [vmem:[%s959_s3 + $0x18] sm:$0xff] (!%p190_p9)   ;;  %v681_v15 = vld [vmem:[%s959_s3 + $0x20] sm:$0xff] (!%p190_p9)   ;;  %v683_v17 = vld [vmem:[%s959_s3 + $0x28] sm:$0xff] (!%p190_p9)   ;;  %s513_s10 = sshll.u32 (!%p190_p9), %s215_s9, 4  ;;  %s757_s15 = smov (!%p190_p9), [#allocation2]   ;;  %s915_s10 = int_to_ptr.vmem [resolvable:$true] %s513_s10 }
  0x13   : > { %265 = vmatpush1.bf16.msra.mxu0 (!%p190_p9), %v671_v4  ;;  %v684_v18 = vld [vmem:[%s959_s3 + $0x70] sm:$0xff] (!%p190_p9)   ;;  %v686_v20 = vld [vmem:[%s959_s3 + $0x78] sm:$0xff] (!%p190_p9)   ;;  %v226_v25 = vld [vmem:[%s958_s2] sm:$0x3] (!%p190_p9)  ;;  %s696_s16 = sshll.u32 (!%p190_p9), %s757_s15, 4  ;;  %s697_s16 = int_to_ptr.vmem [resolvable:$false] %s696_s16 }
  0x14   : > { %v685_v19 = vld [vmem:[%s959_s3 + $0x30] sm:$0xff] (!%p190_p9)   ;;  %v687_v21 = vld [vmem:[%s959_s3 + $0x38] sm:$0xff] (!%p190_p9)   ;;  %v231_v27 = vrot.slane (!%p190_p9), %v226_v25, %v230_v24  ;;  %v235_v28 = vrot.slane (!%p190_p9), %v226_v25, %v234_v26  ;;  %v583_v56 = vld [vmem:[%s960_s4] ss:$0 sm:$0xff] (!%p190_p9)  ;;  %p699_p0 = scmp.lt.s32.totalorder (!%p190_p9), %s915_s10, %s697_s16 }
  0x15   : > { %s217_s11 = scalar_select %p216_p10, %s809_s22, 1  ;;  %607 = vmatpush3.bf16.msra.mxu1 %v675_v9 }
  0x16   : > { %608 = vmatprep.subr.bf16.mxu1 %v676_v10  ;;  %s692_s22 = scalar_lea.vmem %s915_s10, 128 }
  0x17   : > { %s577_s14 = sshll.u32 %s217_s11, 2  ;;  %p693_p11 = scmp.ne.s32.totalorder %s915_s10, %s692_s22 }
  0x18   : > { %s219_s17 = scalar_lea.vmem %s956_s0, %s577_s14  ;;  %s500_s14 = scalar_lea.sflag [#allocation3], %s213_s26 }
  0x19   : > { %v221_v5 = vld [vmem:[%s219_s17] sm:$0xf]  ;;  %609 = vmatpush3.bf16.msra.mxu1 %v677_v11  ;;  %p694_p12 = pnand %p693_p11, %p826_p5  ;;  %s698_s17 = scalar_lea.vmem %s697_s16, 256 }
  0x1a   : > { %582 = vmatmul.mubr.msk.bf16.vlgmr.msra.gmra.mrb[0].mxu0 %vm258_vm0, %v221_v5  ;;  %610 = vmatprep.subr.bf16.mxu1 %v678_v12  ;;  %p700_p1 = scmp.lt.s32.totalorder %s698_s17, %s692_s22 }
  0x1b   : > { %p695_p13 = pneg %p694_p12 }
  0x1c   : > { %p701_p2 = por %p700_p1, %p699_p0 }
  0x1d   : > { %611 = vmatpush3.bf16.msra.mxu1 %v679_v13 }
  0x1e   : > { %612 = vmatprep.subr.bf16.mxu1 %v680_v14  ;;  %p702_p3 = pnand %p701_p2, %p695_p13 }
  0x21   : > { %613 = vmatpush3.bf16.msra.mxu1 %v681_v15 }
  0x22   : > { %614 = vmatprep.subr.bf16.mxu1 %v682_v16 }
  0x25   : > { %615 = vmatpush3.bf16.msra.mxu1 %v683_v17 }
  0x26   : > { %616 = vmatprep.subr.bf16.mxu1 %v684_v18 }
  0x29   : > { %617 = vmatpush3.bf16.msra.mxu1 %v685_v19 }
  0x2a   : > { %618 = vmatprep.subr.bf16.mxu1 %v686_v20 }
  0x2d   : > { %619 = vmatpush3.bf16.msra.mxu1 %v687_v21 }
  0xed   : > { %v296_v29 = vpop.f32.mrb[0].mxu0 }
  0xee   : > { %v297_v30 = vadd.f32 %v296_v29, %v231_v27  ;;  %v298_v31 = vpop.f32.mrb[1].mxu0 }
  0xef   : > { %v299_v32 = vadd.f32 %v298_v31, %v235_v28  ;;  %v300_v33 = vpop.f32.mrb[2].mxu0 }
  0xf0   : > { %v303_v34 = vmul.f32 %v297_v30, %v297_v30  ;;  %v301_v35 = vpop.f32.mrb[3].mxu0 }
  0xf1   : > { %v304_v36 = vmul.f32 %v299_v32, %v299_v32 }
  0xf2   : > { %v305_v37 = vmul.f32 %v303_v34, %v297_v30 }
  0xf3   : > { %v306_v38 = vmul.f32 %v304_v36, %v299_v32 }
  0xf4   : > { %v307_v39 = vmul.f32 0.044715, %v305_v37 }
  0xf5   : > { %v308_v40 = vmul.f32 0.044715, %v306_v38 }
  0xf6   : > { %v309_v41 = vadd.f32 %v307_v39, %v297_v30 }
  0xf7   : > { %v310_v42 = vadd.f32 %v308_v40, %v299_v32 }
  0xf8   : > { %v311_v43 = vmul.f32 0.7978846, %v309_v41 }
  0xf9   : > { %v312_v44 = vmul.f32 0.7978846, %v310_v42 }
  0xfa   : > { %688 = vtanh.f32 %v311_v43 }
  0xfb   : > { %690 = vtanh.f32 %v312_v44 }
 0x104   : > { %v689_v45 = vpop.eup %688 }
 0x105   : > { %v691_v46 = vpop.eup %690  ;;  %v315_v47 = vadd.f32 1.0, %v689_v45 }
 0x106   : > { %v316_v48 = vadd.f32 1.0, %v691_v46 }
 0x107   : > { %v317_v49 = vmul.f32 0.5, %v315_v47 }
 0x108   : > { %v318_v50 = vmul.f32 0.5, %v316_v48 }
 0x109   : > { %v319_v51 = vmul.f32 %v317_v49, %v297_v30 }
 0x10a   : > { %v320_v52 = vmul.f32 %v318_v50, %v299_v32 }
 0x10b   : > { %v321_v54 = vpack.c.bf16 %v319_v51, %v319_v51 }
 0x10c   : > { %v322_v53 = vpack.c.bf16 %v320_v52, %v320_v52 }
 0x10e   : > { %490 = vmatprep.mubr.bf16.mxu1 %v322_v53 }
 0x10f   : > { %491 = vmatmul.mubr.bf16.vlgmr.msra.gmra.mrb[0].mxu1 %v321_v54 }
 0x1e2   : > { %v620_v55 = vpop.f32.mrb[0].mxu1 }
 0x1e3   : > { %v621_v57 = vpop.f32.mrb[1].mxu1 }
 0x1e4   : > { %v622_v58 = vadd.f32 %v621_v57, %v620_v55  ;;  %v623_v59 = vpop.f32.mrb[2].mxu1 }
 0x1e5   : > { %v624_v60 = vpop.f32.mrb[3].mxu1 }
 0x1e6   : > { %v493_v61 = vadd.f32 %v622_v58, %v583_v56 }
 0x1e8   : > { %498 = vst.msk [vmem:[%s215_s9] sm:$0xff] %vm258_vm0, %v493_v61 }
 0x1e9   : > { %705 = shalt.err (!%p702_p3)
}
 0x1ea   : > { %s706_s23 = scalar_lea.hbm %s913_s13, 128  ;;  %s710_s30 = scalar_lea.hbm %s961_s5, 256 }
 0x1eb   : > { %p707_p4 = scmp.ne.s32.totalorder %s913_s13, %s706_s23  ;;  %p711_p9 = scmp.lt.u32.totalorder %s913_s13, %s961_s5 }
 0x1ec   : > { %p712_p10 = scmp.lt.u32.totalorder %s710_s30, %s706_s23  ;;  %p714_p12 = scmp.lt.u32.totalorder %s706_s23, %s913_s13 }
 0x1ed   : > { %p708_p7 = pnand %p707_p4, %p826_p5 }
 0x1ee   : > { %p713_p11 = por %p712_p10, %p711_p9 }
 0x1ef   : > { %p709_p8 = pneg %p708_p7 }
 0x1f0   : > { %p715_p13 = por %p714_p12, %p713_p11 }
 0x1f2   : > { %p716_p0 = pnand %p715_p13, %p709_p8 }
 0x1f4   : > { %719 = shalt.err (!%p716_p0)
}
 0x1f5   : > { %626 = dma.vmem_to_hbm [thread:$0]  (%p826_p5), %s915_s10, 128, %s913_s13, %s500_s14  }
 0x1f6 PF: > { %p632_p1 = scmp.ge.s32.totalorder %s754_s21, 2  ;;  %s525_s8 = sand.u32 1, %s742_s18  }
 0x1f7   : > { %s526_s9 = scalar_lea.sflag [#allocation3], %s525_s8 }
 0x1f8   : > { %p629_p2 = pnand %p632_p1, %p830_p6 }
 0x1fa   : > { %737 = dma.done.wait (!%p629_p2), %s526_s9, 128  }
 0x1fb   : > { %739 = vsyncadd (!%p629_p2), %s526_s9, 4294967168  ;;  %p15_p3 = scmp.ge.s32.totalorder %s813_s24, 4   ;;  %s964_s18 = smov %s746_s19 }
 0x1fc   : > { %s965_s19 = smov %s750_s20  ;;  %s966_s20 = smov %s824_s27 }
 0x1fd   : > { %s967_s21 = smov %s813_s24  ;;  %17 = sbr.rel (!%p15_p3) target bundleno = 3 (0x3), region = 75 }
 0x204   :  { %531 = vsyncpa [#allocation3], 1 }
 0x205   :  { %533 = vsyncpa [#allocation3 + $0x1], 1 }

</bundles_post_ra>
